<compile_context>
chip_gen: v5e
topology: v5e:2x2
jax: 0.10.0
libtpu: 0.0.40
codegen_flags: <defaults>
</compile_context>

<pallas_src>
import functools

import jax
import jax.numpy as jnp
from jax.experimental import pallas as pl
from jax.experimental.pallas import tpu as pltpu


def _sfu_kernel(din, x_ref, f_ref, wx_ref, wf_ref, b_ref, o_ref):
    # x_ref:  (TM, Din)       current row tile of `input`
    # f_ref:  (TM, Dfus)      current row tile of `fusions`
    # wx_ref: (Din, 2*Din)    [Wr_x | Wg_x] pre-transposed to (K, N)
    # wf_ref: (Dfus, 2*Din)   [Wr_f | Wg_f] pre-transposed to (K, N)
    # b_ref:  (1, 2*Din)      [b_r | b_g]
    # o_ref:  (TM, Din)
    x = x_ref[...]
    f = f_ref[...]

    # Both gate pre-activations from one pair of MXU matmuls:
    #   pre = [r_pre | g_pre] = x @ Wx + f @ Wf + [b_r | b_g]   -> (TM, 2*Din)
    pre = (
        jnp.dot(x, wx_ref[...], preferred_element_type=jnp.float32)
        + jnp.dot(f, wf_ref[...], preferred_element_type=jnp.float32)
        + b_ref[...]
    )

    r = jnp.tanh(pre[:, :din])           # EUP
    g = jax.nn.sigmoid(pre[:, din:])     # EUP
    o = g * r + (1.0 - g) * x.astype(jnp.float32)   # VPU
    o_ref[...] = o.astype(o_ref.dtype)


@functools.partial(jax.jit, static_argnames=("tm",))
def sfu(x, fusions, w_r, b_r, w_g, b_g, *, tm=None):
    """
    Args:
      x:       (seq_len, batch, input_size)
      fusions: (seq_len, batch, fusions_size)
      w_r:     (input_size, input_size + fusions_size)   PyTorch Linear weight
      b_r:     (input_size,)
      w_g:     (input_size, input_size + fusions_size)
      b_g:     (input_size,)
    Returns:
      output:  (seq_len, batch, input_size)
    """
    S, B, Din = x.shape
    Dfus = fusions.shape[-1]
    N = S * B

    # Free reshapes — keep the native (S, B, D) memory layout, no transposes
    # of the (large) activations.
    x2 = x.reshape(N, Din)
    f2 = fusions.reshape(N, Dfus)

    # One-time (tiny, weights-only) re-layout in the wrapper:
    #   * split each PyTorch (out, in) weight into input-half / fusion-half
    #     so the concat `m` never exists,
    #   * stack r/g halves along the output dim so both gates come from one
    #     matmul pair,
    #   * transpose to MXU-native (K, N) layout.
    w_x = jnp.concatenate([w_r[:, :Din], w_g[:, :Din]], axis=0).T   # (Din, 2*Din)
    w_f = jnp.concatenate([w_r[:, Din:], w_g[:, Din:]], axis=0).T   # (Dfus, 2*Din)
    b = jnp.concatenate([b_r, b_g]).reshape(1, 2 * Din).astype(jnp.float32)

    # Row tile: big enough to amortize per-step overhead (~0.35 us) and keep
    # DMAs large, small enough to double-buffer comfortably in VMEM on all
    # generations (v7x = 64 MiB).
    if tm is None:
        tm = N if N <= 512 else 512
    grid = (pl.cdiv(N, tm),)

    const = lambda i: (0, 0)          # weights/biases resident across steps
    rows = lambda i: (i, 0)           # row tile advances along the grid

    grid_spec = pltpu.PrefetchScalarGridSpec(
        num_scalar_prefetch=0,
        grid=grid,
        in_specs=[
            pl.BlockSpec((tm, Din), rows),
            pl.BlockSpec((tm, Dfus), rows),
            pl.BlockSpec((Din, 2 * Din), const),
            pl.BlockSpec((Dfus, 2 * Din), const),
            pl.BlockSpec((1, 2 * Din), const),
        ],
        out_specs=pl.BlockSpec((tm, Din), rows),
    )

    out2 = pl.pallas_call(
        functools.partial(_sfu_kernel, Din),
        out_shape=jax.ShapeDtypeStruct((N, Din), x.dtype),
        grid_spec=grid_spec,
        compiler_params=pltpu.CompilerParams(
            dimension_semantics=("parallel",),
        ),
    )(x2, f2, w_x, w_f, b)

    return out2.reshape(S, B, Din)


def _reference(x, fusions, w_r, b_r, w_g, b_g):
    """Pure-JAX reference mirroring the PyTorch forward."""
    m = jnp.concatenate([x, fusions], axis=-1)
    r = jnp.tanh(m @ w_r.T + b_r)
    g = jax.nn.sigmoid(m @ w_g.T + b_g)
    return g * r + (1.0 - g) * x


if __name__ == "__main__":
    key = jax.random.PRNGKey(0)
    S, B, Din, Dfus = 8, 2, 32, 32
    k1, k2, k3, k4, k5, k6 = jax.random.split(key, 6)

    x = jax.random.normal(k1, (S, B, Din), dtype=jnp.float32)
    fusions = jax.random.normal(k2, (S, B, Dfus), dtype=jnp.float32)
    # PyTorch Linear layout: weight (out_features, in_features), bias (out,)
    scale = 1.0 / jnp.sqrt(jnp.float32(Din + Dfus))
    w_r = jax.random.uniform(k3, (Din, Din + Dfus), jnp.float32, -scale, scale)
    b_r = jax.random.uniform(k4, (Din,), jnp.float32, -scale, scale)
    w_g = jax.random.uniform(k5, (Din, Din + Dfus), jnp.float32, -scale, scale)
    b_g = jax.random.uniform(k6, (Din,), jnp.float32, -scale, scale)

    out = sfu(x, fusions, w_r, b_r, w_g, b_g)
    out = jax.block_until_ready(out)

    ref = _reference(x, fusions, w_r, b_r, w_g, b_g)
    assert out.shape == (S, B, Din)
    assert jnp.allclose(out, ref, atol=2e-5, rtol=2e-5)

    print("KERNEL_OK")
</pallas_src>

<mosaic_0001>
module attributes {stable_mosaic.version = 11 : i64} {
  func.func @_sfu_kernel(%arg0: i32, %arg1: memref<16x32xf32, #tpu.memory_space<vmem>>, %arg2: memref<16x32xf32, #tpu.memory_space<vmem>>, %arg3: memref<32x64xf32, #tpu.memory_space<vmem>>, %arg4: memref<32x64xf32, #tpu.memory_space<vmem>>, %arg5: memref<1x64xf32, #tpu.memory_space<vmem>>, %arg6: memref<16x32xf32, #tpu.memory_space<vmem>>) attributes {dimension_semantics = [#tpu.dimension_semantics<parallel>], iteration_bounds = array<i64: 1>, scalar_prefetch = 0 : i64, scratch_operands = 0 : i64, tpu.core_type = #tpu.core_type<tc>, window_params = [{transform_indices = @transform_0, window_bounds = array<i64: 16, 32>}, {transform_indices = @transform_1, window_bounds = array<i64: 16, 32>}, {pipeline_mode = #tpu.pipeline_mode<synchronous>, transform_indices = @transform_2, window_bounds = array<i64: 32, 64>}, {pipeline_mode = #tpu.pipeline_mode<synchronous>, transform_indices = @transform_3, window_bounds = array<i64: 32, 64>}, {pipeline_mode = #tpu.pipeline_mode<synchronous>, transform_indices = @transform_4, window_bounds = array<i64: 1, 64>}, {transform_indices = @transform_5, window_bounds = array<i64: 16, 32>}]} {
    %c0 = arith.constant 0 : index
    %c0_0 = arith.constant 0 : index
    %0 = vector.load %arg1[%c0, %c0_0] : memref<16x32xf32, #tpu.memory_space<vmem>>, vector<16x32xf32>
    %c0_1 = arith.constant 0 : index
    %c0_2 = arith.constant 0 : index
    %1 = vector.load %arg2[%c0_1, %c0_2] : memref<16x32xf32, #tpu.memory_space<vmem>>, vector<16x32xf32>
    %c0_3 = arith.constant 0 : index
    %c0_4 = arith.constant 0 : index
    %2 = vector.load %arg3[%c0_3, %c0_4] : memref<32x64xf32, #tpu.memory_space<vmem>>, vector<32x64xf32>
    %cst = arith.constant dense<0.000000e+00> : vector<16x64xf32>
    %3 = tpu.matmul %0, %2, %cst {dimension_numbers = #tpu.dot_dimension_numbers<[1], [0], [0], [1], [0, 0, 1, 1], [], []>} : vector<16x32xf32>, vector<32x64xf32>, vector<16x64xf32> -> vector<16x64xf32>
    %c0_5 = arith.constant 0 : index
    %c0_6 = arith.constant 0 : index
    %4 = vector.load %arg4[%c0_5, %c0_6] : memref<32x64xf32, #tpu.memory_space<vmem>>, vector<32x64xf32>
    %cst_7 = arith.constant dense<0.000000e+00> : vector<16x64xf32>
    %5 = tpu.matmul %1, %4, %cst_7 {dimension_numbers = #tpu.dot_dimension_numbers<[1], [0], [0], [1], [0, 0, 1, 1], [], []>} : vector<16x32xf32>, vector<32x64xf32>, vector<16x64xf32> -> vector<16x64xf32>
    %6 = arith.addf %3, %5 : vector<16x64xf32>
    %c0_8 = arith.constant 0 : index
    %c0_9 = arith.constant 0 : index
    %7 = vector.load %arg5[%c0_8, %c0_9] : memref<1x64xf32, #tpu.memory_space<vmem>>, vector<1x64xf32>
    %8 = vector.broadcast %7 : vector<1x64xf32> to vector<16x64xf32>
    %9 = arith.addf %6, %8 : vector<16x64xf32>
    %10 = vector.extract_strided_slice %9 {offsets = [0, 0], sizes = [16, 32], strides = [1, 1]} : vector<16x64xf32> to vector<16x32xf32>
    %11 = math.tanh %10 : vector<16x32xf32>
    %12 = vector.extract_strided_slice %9 {offsets = [0, 32], sizes = [16, 32], strides = [1, 1]} : vector<16x64xf32> to vector<16x32xf32>
    %13 = arith.negf %12 : vector<16x32xf32>
    %14 = math.exp %13 : vector<16x32xf32>
    %cst_10 = arith.constant 1.000000e+00 : f32
    %15 = vector.broadcast %cst_10 : f32 to vector<16x32xf32>
    %16 = arith.addf %15, %14 : vector<16x32xf32>
    %17 = arith.divf %15, %16 : vector<16x32xf32>
    %18 = arith.mulf %17, %11 : vector<16x32xf32>
    %cst_11 = arith.constant 1.000000e+00 : f32
    %19 = vector.broadcast %cst_11 : f32 to vector<16x32xf32>
    %20 = arith.subf %19, %17 : vector<16x32xf32>
    %21 = arith.mulf %20, %0 : vector<16x32xf32>
    %22 = arith.addf %18, %21 : vector<16x32xf32>
    %c0_12 = arith.constant 0 : index
    %c0_13 = arith.constant 0 : index
    %23 = vector.load %arg6[%c0_12, %c0_13] : memref<16x32xf32, #tpu.memory_space<vmem>>, vector<16x32xf32>
    tpu.vector_store %arg6[%c0_12, %c0_13], %22 {strides = array<i32>} : memref<16x32xf32, #tpu.memory_space<vmem>>, vector<16x32xf32>,
    return
  }
  func.func @transform_0(%arg0: i32) -> (i32, i32) {
    %c0_i32 = arith.constant 0 : i32
    %c0_i32_0 = arith.constant 0 : i32
    return %arg0, %c0_i32 : i32, i32
  }
  func.func @transform_1(%arg0: i32) -> (i32, i32) {
    %c0_i32 = arith.constant 0 : i32
    %c0_i32_0 = arith.constant 0 : i32
    return %arg0, %c0_i32 : i32, i32
  }
  func.func @transform_2(%arg0: i32) -> (i32, i32) {
    %c0_i32 = arith.constant 0 : i32
    %c0_i32_0 = arith.constant 0 : i32
    %c0_i32_1 = arith.constant 0 : i32
    return %c0_i32, %c0_i32_0 : i32, i32
  }
  func.func @transform_3(%arg0: i32) -> (i32, i32) {
    %c0_i32 = arith.constant 0 : i32
    %c0_i32_0 = arith.constant 0 : i32
    %c0_i32_1 = arith.constant 0 : i32
    return %c0_i32, %c0_i32_0 : i32, i32
  }
  func.func @transform_4(%arg0: i32) -> (i32, i32) {
    %c0_i32 = arith.constant 0 : i32
    %c0_i32_0 = arith.constant 0 : i32
    %c0_i32_1 = arith.constant 0 : i32
    return %c0_i32, %c0_i32_0 : i32, i32
  }
  func.func @transform_5(%arg0: i32) -> (i32, i32) {
    %c0_i32 = arith.constant 0 : i32
    %c0_i32_0 = arith.constant 0 : i32
    return %arg0, %c0_i32 : i32, i32
  }
}

</mosaic_0001>

<bundles_post_ra>
// kernel: sfu.1
= control target key start
LH: loop header
LB: loop body
LE: loop exit
PB: predicated region body
PF: predicated region fallthrough
CT: control target
= control target key end

     0   :  { %s329_s0 = inlined_call_operand.vmem [shape: f32[16,32], index: 0, kind: input, shape index: {}]   ;;  %s330_s1 = inlined_call_operand.vmem [shape: f32[16,32], index: 1, kind: input, shape index: {}]   ;;  %s331_s2 = inlined_call_operand.vmem [shape: f32[32,64], index: 2, kind: input, shape index: {}]   ;;  %s332_s3 = inlined_call_operand.vmem [shape: f32[32,64], index: 3, kind: input, shape index: {}]   ;;  %s333_s4 = inlined_call_operand.vmem [shape: f32[1,64], index: 4, kind: input, shape index: {}]   ;;  %s334_s5 = inlined_call_operand.hbm [shape: f32[16,32], index: 5, kind: output, shape index: {}]  }
   0x1   :  { %v32_v0 = vld [vmem:[%s332_s3 + $0x18] sm:$0xff]  ;;  %v31_v2 = vld [vmem:[%s332_s3 + $0x10] sm:$0xff]  ;;  %v30_v4 = vld [vmem:[%s332_s3 + $0x8] sm:$0xff] }
   0x2   :  { %v28_v1 = vld [vmem:[%s331_s2 + $0x18] sm:$0xff]  ;;  %52 = vmatpush.msra.mxu0 %v32_v0  ;;  %194 = vmatpush.msra.mxu2 %v32_v0  ;;  %v27_v3 = vld [vmem:[%s331_s2 + $0x10] sm:$0xff]  ;;  %v26_v5 = vld [vmem:[%s331_s2 + $0x8] sm:$0xff] }
   0x3   :  { %81 = vmatpush.msra.mxu1 %v28_v1  ;;  %198 = vmatpush.msra.mxu3 %v28_v1  ;;  %v29_v6 = vld [vmem:[%s332_s3] sm:$0xff] }
   0x4   :  { %53 = vmatpush.msra.mxu0 %v31_v2  ;;  %195 = vmatpush.msra.mxu2 %v31_v2 }
   0x5   :  { %82 = vmatpush.msra.mxu1 %v27_v3  ;;  %199 = vmatpush.msra.mxu3 %v27_v3 }
   0x6   :  { %10 = vsyncpa [#allocation3], 0  ;;  %54 = vmatpush.msra.mxu0 %v30_v4  ;;  %196 = vmatpush.msra.mxu2 %v30_v4  ;;  %v25_v7 = vld [vmem:[%s331_s2] sm:$0xff]  ;;  %vm33_vm0 = vcmask 261120   ;;  %v24_v9 = vld [vmem:[%s330_s1 + $0x8] sm:$0xff]  ;;  %s176_s20 = sshll.u32 %s334_s5, 4  ;;  %s177_s20 = int_to_ptr.hbm [resolvable:$true] %s176_s20 }
   0x7   :  { %83 = vmatpush.msra.mxu1 %v26_v5  ;;  %200 = vmatpush.msra.mxu3 %v26_v5  ;;  %v23_v8 = vld [vmem:[%s330_s1] sm:$0xff]  ;;  %v22_v11 = vld [vmem:[%s329_s0 + $0x8] sm:$0xff]  ;;  %s246_s1 = smov 32   ;;  %s249_s21 = smov 128  }
   0x8   :  { %55 = vmatpush.msra.mxu0 %v29_v6  ;;  %197 = vmatpush.msra.mxu2 %v29_v6  ;;  %v21_v10 = vld [vmem:[%s329_s0] sm:$0xff]  ;;  %s247_s0 = smov 96   ;;  %s250_s22 = smov 8  }
   0x9   :  { %84 = vmatpush.msra.mxu1 %v25_v7  ;;  %201 = vmatpush.msra.mxu3 %v25_v7  ;;  %v207_v13 = vld [vmem:[%s333_s4] ss:$0 sm:$0xff]  ;;  %s248_s4 = smov [#allocation2]  }
   0xa   :  { %188 = vmatmul.msk.f32.vlgmr.msra.gmra.mxu0 %vm33_vm0, %v23_v8  ;;  %189 = vmatmul.msk.f32.vlgmr.msra.gmra.mxu2 %vm33_vm0, %v24_v9  ;;  %s174_s17 = sshll.u32 %s248_s4, 4  ;;  %s175_s17 = int_to_ptr.vmem [resolvable:$true] %s174_s17 }
   0xb   :  { %190 = vmatmul.msk.f32.vlgmr.msra.gmra.mxu1 %vm33_vm0, %v21_v10  ;;  %191 = vmatmul.msk.f32.vlgmr.msra.gmra.mxu3 %vm33_vm0, %v22_v11 }
   0xc   :  { %150 = vrot.lane.b32.xlu1 %v21_v10, %s246_s1 }
  0x14   :  { %152 = vrot.lane.b32.xlu1 %v22_v11, %s246_s1 }
  0x7e   :  { %v151_v44 = vpop.permute.xlu1 %150 }
  0x86   :  { %v153_v56 = vpop.permute.xlu1 %152 }
  0x87   :  { %v57_v12 = vpop.f32.mrf.mxu0 }
  0x88   :  { %v86_v14 = vpop.f32.mrf.mxu1 }
  0x89   :  { %v87_v15 = vadd.f32 %v86_v14, %v57_v12 }
  0x8b   :  { %v96_v16 = vadd.f32 %v207_v13, %v87_v15 }
  0x8d   :  { %208 = vtanh.f32 %v96_v16  ;;  %v60_v17 = vpop.f32.mrf.mxu2  ;;  %v192_v23 = vmul.f32 -1.442695, %v96_v16 }
  0x8e   :  { %v89_v18 = vpop.f32.mrf.mxu3 }
  0x8f   :  { %v90_v19 = vadd.f32 %v89_v18, %v60_v17 }
  0x91   :  { %v97_v20 = vadd.f32 %v207_v13, %v90_v19 }
  0x93   :  { %v209_v21 = vpop.eup %208  ;;  %210 = vtanh.f32 %v97_v20  ;;  %v193_v24 = vmul.f32 -1.442695, %v97_v20 }
  0x94   :  { %140 = vrot.lane.b32.xlu0 %v209_v21, %s246_s1  ;;  %212 = vpow2.f32 %v192_v23 }
  0x95   :  { %214 = vpow2.f32 %v193_v24 }
  0x99   :  { %v211_v22 = vpop.eup %210 }
  0x9a   :  { %v213_v25 = vpop.eup %212 }
  0x9b   :  { %v106_v26 = vadd.f32 1.0, %v213_v25  ;;  %v215_v27 = vpop.eup %214 }
  0x9c   :  { %142 = vrot.lane.b32.xlu0 %v211_v22, %s246_s1  ;;  %v107_v28 = vadd.f32 1.0, %v215_v27 }
  0x9d   :  { %216 = vrcp.f32 %v106_v26  ;;  %v119_v37 = vand.u32 2147483648, %v106_v26  ;;  %vm113_vm2 = vweird.f32 %v106_v26  ;;  %v117_v38 = vand.u32 2147483647, %v106_v26 }
  0x9e   :  { %218 = vrcp.f32 %v107_v28  ;;  %v134_v45 = vand.u32 2147483648, %v107_v28  ;;  %vm128_vm6 = vweird.f32 %v107_v28  ;;  %v132_v47 = vand.u32 2147483647, %v107_v28 }
  0x9f   :  { %v120_v41 = vor.u32 1.1754944e-38, %v119_v37  ;;  %vm118_vm4 = vcmp.eq.f32.partialorder %v117_v38, 8.507059e+37 }
  0xa0   :  { %v135_v49 = vor.u32 1.1754944e-38, %v134_v45  ;;  %vm133_vm8 = vcmp.eq.f32.partialorder %v132_v47, 8.507059e+37 }
  0xa3   :  { %v217_v29 = vpop.eup %216 }
  0xa4   :  { %v109_v30 = vmul.f32 %v217_v29, %v106_v26  ;;  %v219_v32 = vpop.eup %218  ;;  %vm114_vm1 = vweird.f32 %v217_v29 }
  0xa5   :  { %v124_v34 = vmul.f32 %v219_v32, %v107_v28  ;;  %vm115_vm3 = vmor %vm113_vm2, %vm114_vm1  ;;  %vm129_vm5 = vweird.f32 %v219_v32 }
  0xa6   :  { %v110_v31 = vsub.f32 1.0, %v109_v30  ;;  %vm130_vm7 = vmor %vm128_vm6, %vm129_vm5 }
  0xa7   :  { %v125_v36 = vsub.f32 1.0, %v124_v34 }
  0xa8   :  { %v111_v33 = vmul.f32 %v217_v29, %v110_v31 }
  0xa9   :  { %v126_v40 = vmul.f32 %v219_v32, %v125_v36 }
  0xaa   :  { %v112_v35 = vadd.f32 %v217_v29, %v111_v33 }
  0xab   :  { %v127_v43 = vadd.f32 %v219_v32, %v126_v40 }
  0xac   :  { %v116_v39 = vsel %vm115_vm3, %v217_v29, %v112_v35 }
  0xad   :  { %v121_v42 = vsel %vm118_vm4, %v120_v41, %v116_v39  ;;  %v131_v48 = vsel %vm130_vm7, %v219_v32, %v127_v43 }
  0xae   :  { %v148_v46 = vsub.f32 1.0, %v121_v42  ;;  %v136_v53 = vsel %vm133_vm8, %v135_v49, %v131_v48 }
  0xaf   :  { %v149_v55 = vsub.f32 1.0, %v136_v53 }
  0xb0   :  { %v156_v51 = vmul.f32 %v151_v44, %v148_v46 }
  0xb1   :  { %v157_v58 = vmul.f32 %v153_v56, %v149_v55 }
 0x106   :  { %v141_v50 = vpop.permute.xlu0 %140 }
 0x107   :  { %v146_v52 = vmul.f32 %v141_v50, %v121_v42 }
 0x109   :  { %v158_v54 = vadd.f32 %v156_v51, %v146_v52 }
 0x10b   :  { %162 = vrot.lane.b32.xlu2 %v158_v54, %s247_s0 }
 0x10e   :  { %v143_v57 = vpop.permute.xlu0 %142 }
 0x10f   :  { %v147_v59 = vmul.f32 %v143_v57, %v136_v53 }
 0x111   :  { %v159_v60 = vadd.f32 %v157_v58, %v147_v59 }
 0x113   :  { %164 = vrot.lane.b32.xlu2 %v159_v60, %s247_s0 }
 0x165   :  { %v163_v61 = vpop.permute.xlu2 %162 }
 0x166   :  { %168 = vst.msk [vmem:[#allocation2] sm:$0xff] %vm33_vm0, %v163_v61 }
 0x16d   :  { %v165_v62 = vpop.permute.xlu2 %164 }
 0x16e   :  { %169 = vst.msk [vmem:[#allocation2 + $0x8] sm:$0xff] %vm33_vm0, %v165_v62 }
 0x16f   :  { %182 = dma.vmem_to_hbm [thread:$0]  %s175_s17, 256, %s177_s20, [#allocation3], %s249_s21, %s249_s21, %s250_s22  }
 0x170   :  { %244 = dma.done.wait [#allocation3], 256  }
 0x171   :  { %245 = vsyncadd [#allocation3], 4294967040 }
 0x172   :  { %187 = vsyncpa [#allocation3], 1 }

</bundles_post_ra>
